<compile_context>
chip_gen: v6e
topology: v6e:2x2x1
jax: 0.10.0
libtpu: 0.0.40
codegen_flags: <defaults>
</compile_context>

<pallas_src>
import functools
import math

import jax
import jax.numpy as jnp
from jax.experimental import pallas as pl
from jax.experimental.pallas import tpu as pltpu

BN_EPS = 1e-5
BN_SCALE = 1.0 / math.sqrt(1.0 + BN_EPS)   # gamma=1, beta=0, mean=0, var=1


def _round_up(a, m):
    return (a + m - 1) // m * m


def _pick_tm(M):
    """Row-block size: multiple of 8, <=512, >=2 blocks whenever M allows."""
    if M >= 4096:
        return 512
    if M >= 512:
        return 256
    if M >= 16:
        return _round_up(M, 16) // 2        # two blocks, multiple of 8
    return 8


_CPARAMS = pltpu.CompilerParams(
    dimension_semantics=("parallel",),
    vmem_limit_bytes=64 * 1024 * 1024,
)


# ---------------------------------------------------------------------------
# Kernels.  Weight blocks cover the full (K, N) array -> fetched once per
# call and kept resident across the M-block grid.  MXU inputs are bf16
# (cast in-register if needed); accumulation is f32.
# ---------------------------------------------------------------------------
def _mm_relu_kernel(x_ref, w_ref, o_ref):
    acc = jnp.dot(x_ref[...].astype(jnp.bfloat16), w_ref[...],
                  preferred_element_type=jnp.float32)
    o_ref[...] = jnp.maximum(acc, 0.0).astype(o_ref.dtype)


def _conv3_identity_kernel(x_ref, w_ref, r_ref, *out_refs, want_preact):
    pre = jnp.dot(x_ref[...].astype(jnp.bfloat16), w_ref[...],
                  preferred_element_type=jnp.float32)
    pre = pre + r_ref[...].astype(jnp.float32)
    out_refs[0][...] = jnp.maximum(pre, 0.0).astype(out_refs[0].dtype)
    if want_preact:
        out_refs[1][...] = pre.astype(out_refs[1].dtype)


def _conv3_proj_kernel(x_ref, w_ref, xs_ref, ws_ref, *out_refs, want_preact):
    # conv3 + bn3 and the shortcut (1x1 conv + bn) fused in one kernel.
    pre = jnp.dot(x_ref[...].astype(jnp.bfloat16), w_ref[...],
                  preferred_element_type=jnp.float32)
    pre = pre + jnp.dot(xs_ref[...].astype(jnp.bfloat16), ws_ref[...],
                        preferred_element_type=jnp.float32)
    out_refs[0][...] = jnp.maximum(pre, 0.0).astype(out_refs[0].dtype)
    if want_preact:
        out_refs[1][...] = pre.astype(out_refs[1].dtype)


# ---------------------------------------------------------------------------
# pallas_call wrappers
# ---------------------------------------------------------------------------
def _row_spec(tm, ncols):
    return pl.BlockSpec((tm, ncols), lambda i: (i, 0))


def _full_spec(nrows, ncols):
    return pl.BlockSpec((nrows, ncols), lambda i: (0, 0))   # resident weight


def _pad_rows(a, rows):
    if a.shape[0] == rows:
        return a
    return jnp.pad(a, ((0, rows - a.shape[0]), (0, 0)))


def matmul_relu(x, w):
    """relu(x @ w), bf16 MXU inputs, f32 accumulation, bf16 output."""
    M, K = x.shape
    _, N = w.shape
    tm = _pick_tm(M)
    Mp = _round_up(M, tm)
    out = pl.pallas_call(
        _mm_relu_kernel,
        out_shape=jax.ShapeDtypeStruct((Mp, N), jnp.bfloat16),
        grid=(Mp // tm,),
        in_specs=[_row_spec(tm, K), _full_spec(K, N)],
        out_specs=_row_spec(tm, N),
        compiler_params=_CPARAMS,
    )(_pad_rows(x, Mp), w)
    return out if Mp == M else out[:M]


def conv3_fused(x, w3, residual=None, xs=None, wsc=None, want_preact=False):
    """relu(x @ w3 + (xs @ wsc if projection else residual)) in one kernel.

    Returns out (f32), plus the pre-activation (f32) when want_preact."""
    M, K = x.shape
    _, N = w3.shape
    tm = _pick_tm(M)
    Mp = _round_up(M, tm)

    n_out = 2 if want_preact else 1
    out_shapes = tuple(jax.ShapeDtypeStruct((Mp, N), jnp.float32)
                       for _ in range(n_out))
    out_specs = tuple(_row_spec(tm, N) for _ in range(n_out))

    if xs is not None:
        kern = functools.partial(_conv3_proj_kernel, want_preact=want_preact)
        Kin = xs.shape[1]
        in_specs = [_row_spec(tm, K), _full_spec(K, N),
                    _row_spec(tm, Kin), _full_spec(Kin, N)]
        args = (_pad_rows(x, Mp), w3, _pad_rows(xs, Mp), wsc)
    else:
        kern = functools.partial(_conv3_identity_kernel,
                                 want_preact=want_preact)
        in_specs = [_row_spec(tm, K), _full_spec(K, N), _row_spec(tm, N)]
        args = (_pad_rows(x, Mp), w3, _pad_rows(residual, Mp))

    res = pl.pallas_call(
        kern,
        out_shape=out_shapes if want_preact else out_shapes[0],
        grid=(Mp // tm,),
        in_specs=in_specs,
        out_specs=out_specs if want_preact else out_specs[0],
        compiler_params=_CPARAMS,
    )(*args)

    if want_preact:
        out, pre = res
        return (out[:M], pre[:M]) if Mp != M else (out, pre)
    return res if Mp == M else res[:M]


# ---------------------------------------------------------------------------
# JAX glue: weight preparation (once, outside jit) and bf16 im2col
# ---------------------------------------------------------------------------
def prepare_params(params):
    """Fold BN scale, reshape torch (Cout,Cin,KH,KW) -> (KH*KW*Cin, Cout),
    cast to bf16.  Run ONCE per model, outside the jitted forward."""
    out = {}
    for name, w in params.items():
        cout, cin, kh, kw = w.shape
        w2d = (jnp.transpose(w, (2, 3, 1, 0)).reshape(kh * kw * cin, cout)
               * BN_SCALE)
        out[name] = w2d.astype(jnp.bfloat16)
    return out


def _im2col(x, kh, kw, stride, padding):
    """x: NHWC (bf16) -> (N*Ho*Wo, kh*kw*C) patches, ordering (kh, kw, C)."""
    N, H, W, C = x.shape
    Ho = (H + 2 * padding - kh) // stride + 1
    Wo = (W + 2 * padding - kw) // stride + 1
    xp = jnp.pad(x, ((0, 0), (padding, padding), (padding, padding), (0, 0)))
    cols = [xp[:, i:i + stride * Ho:stride, j:j + stride * Wo:stride, :]
            for i in range(kh) for j in range(kw)]
    patches = jnp.concatenate(cols, axis=-1)
    return patches.reshape(N * Ho * Wo, kh * kw * C), (Ho, Wo)


# ---------------------------------------------------------------------------
# Bottleneck forward (matches the PyTorch module semantics)
# ---------------------------------------------------------------------------
def bottleneck_forward(x_nchw, wp, stride=1, is_last=False):
    """wp: output of prepare_params (BN-folded bf16 (K, N) weights)."""
    x = jnp.transpose(x_nchw, (0, 2, 3, 1)).astype(jnp.float32)  # NCHW -> NHWC
    N, H, W, cin = x.shape
    planes = wp['conv1'].shape[1]
    cout = wp['conv3'].shape[1]

    # conv1 (1x1) + bn1 + relu : one kernel, bf16 output
    out = matmul_relu(x.reshape(N * H * W, cin), wp['conv1'])
    out = out.reshape(N, H, W, planes)

    # conv2 (3x3, stride, pad=1) + bn2 + relu : bf16 im2col -> one kernel
    patches, (Ho, Wo) = _im2col(out, 3, 3, stride, 1)
    out = matmul_relu(patches, wp['conv2'])                 # (N*Ho*Wo, planes)

    # conv3 (1x1) + bn3 + residual add (+relu); shortcut fused into the kernel
    if 'shortcut' in wp:
        xs = x[:, ::stride, ::stride, :].reshape(N * Ho * Wo, cin)
        res = conv3_fused(out, wp['conv3'], xs=xs, wsc=wp['shortcut'],
                          want_preact=is_last)
    else:
        identity = x.reshape(N * H * W, cin)                # f32 residual
        res = conv3_fused(out, wp['conv3'], residual=identity,
                          want_preact=is_last)

    if is_last:
        o2d, p2d = res
        o = jnp.transpose(o2d.reshape(N, Ho, Wo, cout), (0, 3, 1, 2))
        p = jnp.transpose(p2d.reshape(N, Ho, Wo, cout), (0, 3, 1, 2))
        return o, p
    return jnp.transpose(res.reshape(N, Ho, Wo, cout), (0, 3, 1, 2))


# ---------------------------------------------------------------------------
# Deterministic parameter construction (matches module __init__ shapes)
# ---------------------------------------------------------------------------
def _conv_init(key, shape):
    cout, cin, kh, kw = shape
    bound = 1.0 / math.sqrt(cin * kh * kw)   # PyTorch Conv2d default bound
    return jax.random.uniform(key, shape, jnp.float32, -bound, bound)


def make_params(key, in_planes, planes, stride, expansion=4):
    ks = jax.random.split(key, 4)
    p = {
        'conv1': _conv_init(ks[0], (planes, in_planes, 1, 1)),
        'conv2': _conv_init(ks[1], (planes, planes, 3, 3)),
        'conv3': _conv_init(ks[2], (expansion * planes, planes, 1, 1)),
    }
    if stride != 1 or in_planes != expansion * planes:
        p['shortcut'] = _conv_init(ks[3], (expansion * planes, in_planes, 1, 1))
    return p


# ---------------------------------------------------------------------------
# Pure-JAX f32 reference (lenient sanity check of the bf16 MXU path)
# ---------------------------------------------------------------------------
def _conv_ref(x_nhwc, w_torch, stride, padding):
    w = jnp.transpose(w_torch, (2, 3, 1, 0))   # HWIO
    return jax.lax.conv_general_dilated(
        x_nhwc, w, window_strides=(stride, stride),
        padding=[(padding, padding), (padding, padding)],
        dimension_numbers=('NHWC', 'HWIO', 'NHWC'))


def bottleneck_ref(x_nchw, params, stride, is_last):
    x = jnp.transpose(x_nchw, (0, 2, 3, 1))
    out = jax.nn.relu(_conv_ref(x, params['conv1'], 1, 0) * BN_SCALE)
    out = jax.nn.relu(_conv_ref(out, params['conv2'], stride, 1) * BN_SCALE)
    out = _conv_ref(out, params['conv3'], 1, 0) * BN_SCALE
    sc = (_conv_ref(x, params['shortcut'], stride, 0) * BN_SCALE
          if 'shortcut' in params else x)
    pre = out + sc
    o = jnp.transpose(jax.nn.relu(pre), (0, 3, 1, 2))
    pre = jnp.transpose(pre, (0, 3, 1, 2))
    return (o, pre) if is_last else o


if __name__ == "__main__":
    key = jax.random.PRNGKey(0)
    pkey_a, xkey_a, pkey_b, xkey_b = jax.random.split(key, 4)

    # --- Block A: projection shortcut (stride=2), is_last=True -------------
    in_planes, planes, stride = 16, 8, 2
    params_a = make_params(pkey_a, in_planes, planes, stride)
    wp_a = prepare_params(params_a)             # folded / cast once, outside jit
    x_a = jax.random.normal(xkey_a, (2, in_planes, 16, 16), jnp.float32)  # NCHW

    fwd_a = jax.jit(functools.partial(bottleneck_forward, stride=stride,
                                      is_last=True))
    out_a, pre_a = fwd_a(x_a, wp_a)
    jax.block_until_ready((out_a, pre_a))
    assert out_a.shape == (2, 4 * planes, 8, 8), out_a.shape
    assert pre_a.shape == out_a.shape
    assert bool(jnp.all(jnp.isfinite(out_a)))
    assert bool(jnp.all(jnp.isfinite(pre_a)))

    ref_out, ref_pre = bottleneck_ref(x_a, params_a, stride, True)
    scale = float(jnp.max(jnp.abs(ref_pre))) + 1e-6
    err_o = float(jnp.max(jnp.abs(out_a - ref_out))) / scale
    err_p = float(jnp.max(jnp.abs(pre_a - ref_pre))) / scale
    assert err_o < 0.05 and err_p < 0.05, (err_o, err_p)

    # --- Block B: identity shortcut (stride=1), is_last=False --------------
    in_planes_b, planes_b = 32, 8               # in_planes == 4*planes -> identity
    params_b = make_params(pkey_b, in_planes_b, planes_b, 1)
    wp_b = prepare_params(params_b)
    x_b = jax.random.normal(xkey_b, (2, in_planes_b, 8, 8), jnp.float32)

    fwd_b = jax.jit(functools.partial(bottleneck_forward, stride=1,
                                      is_last=False))
    out_b = fwd_b(x_b, wp_b)
    jax.block_until_ready(out_b)
    assert out_b.shape == (2, 4 * planes_b, 8, 8), out_b.shape
    assert bool(jnp.all(jnp.isfinite(out_b)))

    ref_b = bottleneck_ref(x_b, params_b, 1, False)
    scale_b = float(jnp.max(jnp.abs(ref_b))) + 1e-6
    err_b = float(jnp.max(jnp.abs(out_b - ref_b))) / scale_b
    assert err_b < 0.05, err_b

    print("KERNEL_OK")
</pallas_src>

<mosaic_0001>
module attributes {stable_mosaic.version = 11 : i64} {
  func.func @_mm_relu_kernel(%arg0: i32, %arg1: memref<256x16xf32, #tpu.memory_space<vmem>>, %arg2: memref<16x8xbf16, #tpu.memory_space<vmem>>, %arg3: memref<256x8xbf16, #tpu.memory_space<vmem>>) attributes {dimension_semantics = [#tpu.dimension_semantics<parallel>], iteration_bounds = array<i64: 2>, scalar_prefetch = 0 : i64, scratch_operands = 0 : i64, tpu.core_type = #tpu.core_type<tc>, window_params = [{transform_indices = @transform_0, window_bounds = array<i64: 256, 16>}, {pipeline_mode = #tpu.pipeline_mode<synchronous>, transform_indices = @transform_1, window_bounds = array<i64: 16, 8>}, {transform_indices = @transform_2, window_bounds = array<i64: 256, 8>}]} {
    %c0 = arith.constant 0 : index
    %c0_0 = arith.constant 0 : index
    %0 = vector.load %arg1[%c0, %c0_0] : memref<256x16xf32, #tpu.memory_space<vmem>>, vector<256x16xf32>
    %1 = arith.truncf %0 : vector<256x16xf32> to vector<256x16xbf16>
    %c0_1 = arith.constant 0 : index
    %c0_2 = arith.constant 0 : index
    %2 = vector.load %arg2[%c0_1, %c0_2] : memref<16x8xbf16, #tpu.memory_space<vmem>>, vector<16x8xbf16>
    %cst = arith.constant dense<0.000000e+00> : vector<256x8xf32>
    %3 = tpu.matmul %1, %2, %cst {dimension_numbers = #tpu.dot_dimension_numbers<[1], [0], [0], [1], [0, 0, 1, 1], [], []>} : vector<256x16xbf16>, vector<16x8xbf16>, vector<256x8xf32> -> vector<256x8xf32>
    %cst_3 = arith.constant 0.000000e+00 : f32
    %4 = vector.broadcast %cst_3 : f32 to vector<256x8xf32>
    %5 = arith.maximumf %3, %4 : vector<256x8xf32>
    %6 = arith.truncf %5 : vector<256x8xf32> to vector<256x8xbf16>
    %c0_4 = arith.constant 0 : index
    %c0_5 = arith.constant 0 : index
    %7 = vector.load %arg3[%c0_4, %c0_5] : memref<256x8xbf16, #tpu.memory_space<vmem>>, vector<256x8xbf16>
    tpu.vector_store %arg3[%c0_4, %c0_5], %6 {strides = array<i32>} : memref<256x8xbf16, #tpu.memory_space<vmem>>, vector<256x8xbf16>,
    return
  }
  func.func @transform_0(%arg0: i32) -> (i32, i32) {
    %c0_i32 = arith.constant 0 : i32
    %c0_i32_0 = arith.constant 0 : i32
    return %arg0, %c0_i32 : i32, i32
  }
  func.func @transform_1(%arg0: i32) -> (i32, i32) {
    %c0_i32 = arith.constant 0 : i32
    %c0_i32_0 = arith.constant 0 : i32
    %c0_i32_1 = arith.constant 0 : i32
    return %c0_i32, %c0_i32_0 : i32, i32
  }
  func.func @transform_2(%arg0: i32) -> (i32, i32) {
    %c0_i32 = arith.constant 0 : i32
    %c0_i32_0 = arith.constant 0 : i32
    return %arg0, %c0_i32 : i32, i32
  }
}

module attributes {stable_mosaic.version = 11 : i64} {
  func.func @_mm_relu_kernel(%arg0: i32, %arg1: memref<64x72xbf16, #tpu.memory_space<vmem>>, %arg2: memref<72x8xbf16, #tpu.memory_space<vmem>>, %arg3: memref<64x8xbf16, #tpu.memory_space<vmem>>) attributes {dimension_semantics = [#tpu.dimension_semantics<parallel>], iteration_bounds = array<i64: 2>, scalar_prefetch = 0 : i64, scratch_operands = 0 : i64, tpu.core_type = #tpu.core_type<tc>, window_params = [{transform_indices = @transform_0, window_bounds = array<i64: 64, 72>}, {pipeline_mode = #tpu.pipeline_mode<synchronous>, transform_indices = @transform_1, window_bounds = array<i64: 72, 8>}, {transform_indices = @transform_2, window_bounds = array<i64: 64, 8>}]} {
    %c0 = arith.constant 0 : index
    %c0_0 = arith.constant 0 : index
    %0 = vector.load %arg1[%c0, %c0_0] : memref<64x72xbf16, #tpu.memory_space<vmem>>, vector<64x72xbf16>
    %c0_1 = arith.constant 0 : index
    %c0_2 = arith.constant 0 : index
    %1 = vector.load %arg2[%c0_1, %c0_2] : memref<72x8xbf16, #tpu.memory_space<vmem>>, vector<72x8xbf16>
    %cst = arith.constant dense<0.000000e+00> : vector<64x8xf32>
    %2 = tpu.matmul %0, %1, %cst {dimension_numbers = #tpu.dot_dimension_numbers<[1], [0], [0], [1], [0, 0, 1, 1], [], []>} : vector<64x72xbf16>, vector<72x8xbf16>, vector<64x8xf32> -> vector<64x8xf32>
    %cst_3 = arith.constant 0.000000e+00 : f32
    %3 = vector.broadcast %cst_3 : f32 to vector<64x8xf32>
    %4 = arith.maximumf %2, %3 : vector<64x8xf32>
    %5 = arith.truncf %4 : vector<64x8xf32> to vector<64x8xbf16>
    %c0_4 = arith.constant 0 : index
    %c0_5 = arith.constant 0 : index
    %6 = vector.load %arg3[%c0_4, %c0_5] : memref<64x8xbf16, #tpu.memory_space<vmem>>, vector<64x8xbf16>
    tpu.vector_store %arg3[%c0_4, %c0_5], %5 {strides = array<i32>} : memref<64x8xbf16, #tpu.memory_space<vmem>>, vector<64x8xbf16>,
    return
  }
  func.func @transform_0(%arg0: i32) -> (i32, i32) {
    %c0_i32 = arith.constant 0 : i32
    %c0_i32_0 = arith.constant 0 : i32
    return %arg0, %c0_i32 : i32, i32
  }
  func.func @transform_1(%arg0: i32) -> (i32, i32) {
    %c0_i32 = arith.constant 0 : i32
    %c0_i32_0 = arith.constant 0 : i32
    %c0_i32_1 = arith.constant 0 : i32
    return %c0_i32, %c0_i32_0 : i32, i32
  }
  func.func @transform_2(%arg0: i32) -> (i32, i32) {
    %c0_i32 = arith.constant 0 : i32
    %c0_i32_0 = arith.constant 0 : i32
    return %arg0, %c0_i32 : i32, i32
  }
}

module attributes {stable_mosaic.version = 11 : i64} {
  func.func @_conv3_proj_kernel(%arg0: i32, %arg1: memref<64x8xbf16, #tpu.memory_space<vmem>>, %arg2: memref<8x32xbf16, #tpu.memory_space<vmem>>, %arg3: memref<64x16xf32, #tpu.memory_space<vmem>>, %arg4: memref<16x32xbf16, #tpu.memory_space<vmem>>, %arg5: memref<64x32xf32, #tpu.memory_space<vmem>>, %arg6: memref<64x32xf32, #tpu.memory_space<vmem>>) attributes {dimension_semantics = [#tpu.dimension_semantics<parallel>], iteration_bounds = array<i64: 2>, scalar_prefetch = 0 : i64, scratch_operands = 0 : i64, tpu.core_type = #tpu.core_type<tc>, window_params = [{transform_indices = @transform_0, window_bounds = array<i64: 64, 8>}, {pipeline_mode = #tpu.pipeline_mode<synchronous>, transform_indices = @transform_1, window_bounds = array<i64: 8, 32>}, {transform_indices = @transform_2, window_bounds = array<i64: 64, 16>}, {pipeline_mode = #tpu.pipeline_mode<synchronous>, transform_indices = @transform_3, window_bounds = array<i64: 16, 32>}, {transform_indices = @transform_4, window_bounds = array<i64: 64, 32>}, {transform_indices = @transform_5, window_bounds = array<i64: 64, 32>}]} {
    %c0 = arith.constant 0 : index
    %c0_0 = arith.constant 0 : index
    %0 = vector.load %arg1[%c0, %c0_0] : memref<64x8xbf16, #tpu.memory_space<vmem>>, vector<64x8xbf16>
    %c0_1 = arith.constant 0 : index
    %c0_2 = arith.constant 0 : index
    %1 = vector.load %arg2[%c0_1, %c0_2] : memref<8x32xbf16, #tpu.memory_space<vmem>>, vector<8x32xbf16>
    %cst = arith.constant dense<0.000000e+00> : vector<64x32xf32>
    %2 = tpu.matmul %0, %1, %cst {dimension_numbers = #tpu.dot_dimension_numbers<[1], [0], [0], [1], [0, 0, 1, 1], [], []>} : vector<64x8xbf16>, vector<8x32xbf16>, vector<64x32xf32> -> vector<64x32xf32>
    %c0_3 = arith.constant 0 : index
    %c0_4 = arith.constant 0 : index
    %3 = vector.load %arg3[%c0_3, %c0_4] : memref<64x16xf32, #tpu.memory_space<vmem>>, vector<64x16xf32>
    %4 = arith.truncf %3 : vector<64x16xf32> to vector<64x16xbf16>
    %c0_5 = arith.constant 0 : index
    %c0_6 = arith.constant 0 : index
    %5 = vector.load %arg4[%c0_5, %c0_6] : memref<16x32xbf16, #tpu.memory_space<vmem>>, vector<16x32xbf16>
    %cst_7 = arith.constant dense<0.000000e+00> : vector<64x32xf32>
    %6 = tpu.matmul %4, %5, %cst_7 {dimension_numbers = #tpu.dot_dimension_numbers<[1], [0], [0], [1], [0, 0, 1, 1], [], []>} : vector<64x16xbf16>, vector<16x32xbf16>, vector<64x32xf32> -> vector<64x32xf32>
    %7 = arith.addf %2, %6 : vector<64x32xf32>
    %cst_8 = arith.constant 0.000000e+00 : f32
    %8 = vector.broadcast %cst_8 : f32 to vector<64x32xf32>
    %9 = arith.maximumf %7, %8 : vector<64x32xf32>
    %c0_9 = arith.constant 0 : index
    %c0_10 = arith.constant 0 : index
    %10 = vector.load %arg5[%c0_9, %c0_10] : memref<64x32xf32, #tpu.memory_space<vmem>>, vector<64x32xf32>
    tpu.vector_store %arg5[%c0_9, %c0_10], %9 {strides = array<i32>} : memref<64x32xf32, #tpu.memory_space<vmem>>, vector<64x32xf32>,
    %c0_11 = arith.constant 0 : index
    %c0_12 = arith.constant 0 : index
    %11 = vector.load %arg6[%c0_11, %c0_12] : memref<64x32xf32, #tpu.memory_space<vmem>>, vector<64x32xf32>
    tpu.vector_store %arg6[%c0_11, %c0_12], %7 {strides = array<i32>} : memref<64x32xf32, #tpu.memory_space<vmem>>, vector<64x32xf32>,
    return
  }
  func.func @transform_0(%arg0: i32) -> (i32, i32) {
    %c0_i32 = arith.constant 0 : i32
    %c0_i32_0 = arith.constant 0 : i32
    return %arg0, %c0_i32 : i32, i32
  }
  func.func @transform_1(%arg0: i32) -> (i32, i32) {
    %c0_i32 = arith.constant 0 : i32
    %c0_i32_0 = arith.constant 0 : i32
    %c0_i32_1 = arith.constant 0 : i32
    return %c0_i32, %c0_i32_0 : i32, i32
  }
  func.func @transform_2(%arg0: i32) -> (i32, i32) {
    %c0_i32 = arith.constant 0 : i32
    %c0_i32_0 = arith.constant 0 : i32
    return %arg0, %c0_i32 : i32, i32
  }
  func.func @transform_3(%arg0: i32) -> (i32, i32) {
    %c0_i32 = arith.constant 0 : i32
    %c0_i32_0 = arith.constant 0 : i32
    %c0_i32_1 = arith.constant 0 : i32
    return %c0_i32, %c0_i32_0 : i32, i32
  }
  func.func @transform_4(%arg0: i32) -> (i32, i32) {
    %c0_i32 = arith.constant 0 : i32
    %c0_i32_0 = arith.constant 0 : i32
    return %arg0, %c0_i32 : i32, i32
  }
  func.func @transform_5(%arg0: i32) -> (i32, i32) {
    %c0_i32 = arith.constant 0 : i32
    %c0_i32_0 = arith.constant 0 : i32
    return %arg0, %c0_i32 : i32, i32
  }
}

</mosaic_0001>

<bundles_post_ra>
// kernel: bottleneck_forward.3
= control target key start
LH: loop header
LB: loop body
LE: loop exit
PB: predicated region body
PF: predicated region fallthrough
CT: control target
= control target key end

     0   :  { %s840_s9 = smov 0   ;;  %s980_s0 = inlined_call_operand.vmem [shape: f32[512,16], index: 0, kind: input, shape index: {}]   ;;  %s981_s1 = inlined_call_operand.vmem [shape: bf16[16,8], index: 1, kind: input, shape index: {}]   ;;  %s982_s2 = inlined_call_operand.vmem [shape: bf16[512,8], index: 2, kind: output, shape index: {}]  }
   0x1 LB: > { %s663_s10 = sadd.s32 4294967295, %s823_s9   ;;  %p667_p0 = scmp.ge.s32.totalorder %s823_s9, 1  ;;  %s823_s9 = sphi %s840_s9, %s12_s9  }
   0x2   : > { %p113_p1 = scmp.lt.s32.totalorder %s823_s9, 3 }
   0x4   : > { %p114_p2 = pnand %p667_p0, %p113_p1 }
   0x5   : > { %s668_s13 = sshll.u32 (!%p114_p2), %s663_s10, 5 }
   0x6   : > { %117 = sbr.rel (%p114_p2) target bundleno = 247 (0xf7), region = 28  ;;  %p136_p3 = scmp.lt.s32.totalorder (!%p114_p2), %s668_s13, 63 }
   0xb   : > { %v816_v0 = vld [vmem:[%s981_s1] sm:$0xff]   ;;  %s984_s13 = smov (!%p136_p3, %s668_s13), 63  ;;  %vm204_vm0 = vcmask 130048   ;;  %vm574_vm1 = vcmask 60416  }
   0xc   : > { %772 = vmatprep.subr.bf16.mxu0 %v816_v0  ;;  %806 = vmatprep.subr.bf16.mxu1 %v816_v0  ;;  %s669_s14 = sshll.u32 %s984_s13, 3  ;;  %s671_s18 = sshll.u32 %s984_s13, 2 }
   0xd   : > { %773 = vmatpush3.bf16.msra.mxu0 %v816_v0  ;;  %807 = vmatpush3.bf16.msra.mxu1 %v816_v0  ;;  %s857_s17 = scalar_lea.vmem %s980_s0, %s669_s14  ;;  %s911_s21 = scalar_lea.vmem %s982_s2, %s671_s18 }
   0xe   : > { %v148_v1 = vld [vmem:[%s857_s17] sm:$0xff]  ;;  %v149_v2 = vld [vmem:[%s857_s17 + $0x8] sm:$0xff]  ;;  %v150_v6 = vld [vmem:[%s857_s17 + $0x10] sm:$0xff] }
   0xf   : > { %v164_v3 = vld [vmem:[%s857_s17 + $0x80] sm:$0xff]  ;;  %v180_v4 = vpack.c.bf16 %v149_v2, %v148_v1  ;;  %v165_v5 = vld [vmem:[%s857_s17 + $0x88] sm:$0xff]  ;;  %v151_v7 = vld [vmem:[%s857_s17 + $0x18] sm:$0xff] }
  0x10   : > { %v188_v8 = vpack.c.bf16 %v165_v5, %v164_v3  ;;  %v181_v9 = vpack.c.bf16 %v151_v7, %v150_v6  ;;  %v166_v10 = vld [vmem:[%s857_s17 + $0x90] sm:$0xff]  ;;  %v167_v11 = vld [vmem:[%s857_s17 + $0x98] sm:$0xff]  ;;  %v152_v12 = vld [vmem:[%s857_s17 + $0x20] sm:$0xff] }
  0x11   : > { %774 = vmatprep.mubr.msk.bf16.mxu0 %vm204_vm0, %v180_v4  ;;  %v189_v13 = vpack.c.bf16 %v167_v11, %v166_v10  ;;  %v153_v14 = vld [vmem:[%s857_s17 + $0x28] sm:$0xff]  ;;  %v168_v15 = vld [vmem:[%s857_s17 + $0xa0] sm:$0xff]  ;;  %v154_v19 = vld [vmem:[%s857_s17 + $0x30] sm:$0xff] }
  0x12   : > { %v169_v16 = vld [vmem:[%s857_s17 + $0xa8] sm:$0xff]  ;;  %790 = vmatprep.mubr.msk.bf16.mxu1 %vm204_vm0, %v188_v8  ;;  %775 = vmatmul.mubr.msk.bf16.vlgmr.msra.gmra.mxu0 %vm204_vm0, %v181_v9  ;;  %v182_v17 = vpack.c.bf16 %v153_v14, %v152_v12  ;;  %v155_v20 = vld [vmem:[%s857_s17 + $0x38] sm:$0xff]  ;;  %v170_v21 = vld [vmem:[%s857_s17 + $0xb0] sm:$0xff] }
  0x13   : > { %v190_v18 = vpack.c.bf16 %v169_v16, %v168_v15  ;;  %791 = vmatmul.mubr.msk.bf16.vlgmr.msra.gmra.mxu1 %vm204_vm0, %v189_v13  ;;  %v171_v22 = vld [vmem:[%s857_s17 + $0xb8] sm:$0xff]  ;;  %v156_v23 = vld [vmem:[%s857_s17 + $0x40] sm:$0xff]  ;;  %v157_v24 = vld [vmem:[%s857_s17 + $0x48] sm:$0xff]  ;;  %v183_v27 = vpack.c.bf16 %v155_v20, %v154_v19 }
  0x14   : > { %778 = vmatprep.mubr.msk.bf16.mxu0 %vm204_vm0, %v182_v17  ;;  %v172_v25 = vld [vmem:[%s857_s17 + $0xc0] sm:$0xff]  ;;  %v173_v26 = vld [vmem:[%s857_s17 + $0xc8] sm:$0xff]  ;;  %v191_v28 = vpack.c.bf16 %v171_v22, %v170_v21  ;;  %v184_v29 = vpack.c.bf16 %v157_v24, %v156_v23  ;;  %v158_v31 = vld [vmem:[%s857_s17 + $0x50] sm:$0xff] }
  0x15   : > { %794 = vmatprep.mubr.msk.bf16.mxu1 %vm204_vm0, %v190_v18  ;;  %v192_v30 = vpack.c.bf16 %v173_v26, %v172_v25  ;;  %v159_v32 = vld [vmem:[%s857_s17 + $0x58] sm:$0xff]  ;;  %v174_v33 = vld [vmem:[%s857_s17 + $0xd0] sm:$0xff]  ;;  %v160_v35 = vld [vmem:[%s857_s17 + $0x60] sm:$0xff] }
  0x16   : > { %v175_v34 = vld [vmem:[%s857_s17 + $0xd8] sm:$0xff]  ;;  %v161_v36 = vld [vmem:[%s857_s17 + $0x68] sm:$0xff]  ;;  %v176_v37 = vld [vmem:[%s857_s17 + $0xe0] sm:$0xff]  ;;  %v185_v39 = vpack.c.bf16 %v159_v32, %v158_v31 }
  0x17   : > { %v177_v38 = vld [vmem:[%s857_s17 + $0xe8] sm:$0xff]  ;;  %v193_v40 = vpack.c.bf16 %v175_v34, %v174_v33  ;;  %v186_v41 = vpack.c.bf16 %v161_v36, %v160_v35  ;;  %v162_v43 = vld [vmem:[%s857_s17 + $0x70] sm:$0xff]  ;;  %v163_v44 = vld [vmem:[%s857_s17 + $0x78] sm:$0xff] }
  0x18   : > { %v194_v42 = vpack.c.bf16 %v177_v38, %v176_v37  ;;  %v178_v45 = vld [vmem:[%s857_s17 + $0xf0] sm:$0xff]  ;;  %v179_v46 = vld [vmem:[%s857_s17 + $0xf8] sm:$0xff]  ;;  %v187_v47 = vpack.c.bf16 %v163_v44, %v162_v43 }
  0x19   : > { %v195_v48 = vpack.c.bf16 %v179_v46, %v178_v45 }
  0x1a   : > { %779 = vmatmul.mubr.msk.bf16.gmra.mxu0 %vm204_vm0, %v183_v27 }
  0x1b   : > { %795 = vmatmul.mubr.msk.bf16.gmra.mxu1 %vm204_vm0, %v191_v28  ;;  %782 = vmatprep.mubr.msk.bf16.mxu0 %vm204_vm0, %v184_v29 }
  0x1c   : > { %798 = vmatprep.mubr.msk.bf16.mxu1 %vm204_vm0, %v192_v30 }
  0x22   : > { %783 = vmatmul.mubr.msk.bf16.gmra.mxu0 %vm204_vm0, %v185_v39 }
  0x23   : > { %799 = vmatmul.mubr.msk.bf16.gmra.mxu1 %vm204_vm0, %v193_v40  ;;  %786 = vmatprep.mubr.msk.bf16.mxu0 %vm204_vm0, %v186_v41 }
  0x24   : > { %802 = vmatprep.mubr.msk.bf16.mxu1 %vm204_vm0, %v194_v42 }
  0x2a   : > { %787 = vmatmul.mubr.msk.bf16.gmra.mxu0 %vm204_vm0, %v187_v47 }
  0x2b   : > { %803 = vmatmul.mubr.msk.bf16.gmra.mxu1 %vm204_vm0, %v195_v48 }
  0xd2   : > { %v776_v49 = vpop.f32.mrf.mxu0 }
  0xd3   : > { %v416_v50 = vmax.f32 %v776_v49, 0.0  ;;  %v792_v51 = vpop.f32.mrf.mxu1 }
  0xd4   : > { %v432_v52 = vmax.f32 %v792_v51, 0.0  ;;  %v287_v53 = vpop.f32.mrf.mxu0 }
  0xd5   : > { %v725_v54 = vpack.c.bf16 %v416_v50, %v416_v50  ;;  %v414_v55 = vmax.f32 %v287_v53, 0.0  ;;  %v351_v56 = vpop.f32.mrf.mxu1 }
  0xd6   : > { %v741_v57 = vpack.c.bf16 %v432_v52, %v432_v52  ;;  %v430_v58 = vmax.f32 %v351_v56, 0.0  ;;  %v777_v59 = vpop.f32.mrf.mxu0 }
  0xd7   : > { %577 = vst.msk [vmem:[%s911_s21 + $0x8] sm:$0xf] %vm574_vm1, %v725_v54  ;;  %v723_v60 = vpack.c.bf16 %v414_v55, %v414_v55  ;;  %v417_v61 = vmax.f32 %v777_v59, 0.0  ;;  %v793_v62 = vpop.f32.mrf.mxu1 }
  0xd8   : > { %593 = vst.msk [vmem:[%s911_s21 + $0x48] sm:$0xf] %vm574_vm1, %v741_v57  ;;  %v739_v63 = vpack.c.bf16 %v430_v58, %v430_v58  ;;  %v433_v0 = vmax.f32 %v793_v62, 0.0  ;;  %v290_v1 = vpop.f32.mrf.mxu0 }
  0xd9   : > { %575 = vst.msk [vmem:[%s911_s21] sm:$0xf] %vm574_vm1, %v723_v60  ;;  %v726_v2 = vpack.c.bf16 %v417_v61, %v417_v61  ;;  %v415_v3 = vmax.f32 %v290_v1, 0.0  ;;  %v354_v4 = vpop.f32.mrf.mxu1 }
  0xda   : > { %591 = vst.msk [vmem:[%s911_s21 + $0x40] sm:$0xf] %vm574_vm1, %v739_v63  ;;  %v742_v5 = vpack.c.bf16 %v433_v0, %v433_v0  ;;  %v431_v6 = vmax.f32 %v354_v4, 0.0  ;;  %v780_v7 = vpop.f32.mrf.mxu0 }
  0xdb   : > { %578 = vst.msk [vmem:[%s911_s21 + $0xc] sm:$0xf] %vm574_vm1, %v726_v2  ;;  %v724_v8 = vpack.c.bf16 %v415_v3, %v415_v3  ;;  %v420_v9 = vmax.f32 %v780_v7, 0.0  ;;  %v796_v10 = vpop.f32.mrf.mxu1 }
  0xdc   : > { %594 = vst.msk [vmem:[%s911_s21 + $0x4c] sm:$0xf] %vm574_vm1, %v742_v5  ;;  %v740_v11 = vpack.c.bf16 %v431_v6, %v431_v6  ;;  %v436_v12 = vmax.f32 %v796_v10, 0.0  ;;  %v303_v13 = vpop.f32.mrf.mxu0 }
  0xdd   : > { %576 = vst.msk [vmem:[%s911_s21 + $0x4] sm:$0xf] %vm574_vm1, %v724_v8  ;;  %v729_v14 = vpack.c.bf16 %v420_v9, %v420_v9  ;;  %v418_v15 = vmax.f32 %v303_v13, 0.0  ;;  %v367_v16 = vpop.f32.mrf.mxu1 }
  0xde   : > { %592 = vst.msk [vmem:[%s911_s21 + $0x44] sm:$0xf] %vm574_vm1, %v740_v11  ;;  %v745_v17 = vpack.c.bf16 %v436_v12, %v436_v12  ;;  %v434_v18 = vmax.f32 %v367_v16, 0.0  ;;  %v781_v19 = vpop.f32.mrf.mxu0 }
  0xdf   : > { %581 = vst.msk [vmem:[%s911_s21 + $0x18] sm:$0xf] %vm574_vm1, %v729_v14  ;;  %v727_v20 = vpack.c.bf16 %v418_v15, %v418_v15  ;;  %v421_v21 = vmax.f32 %v781_v19, 0.0  ;;  %v797_v22 = vpop.f32.mrf.mxu1 }
  0xe0   : > { %597 = vst.msk [vmem:[%s911_s21 + $0x58] sm:$0xf] %vm574_vm1, %v745_v17  ;;  %v743_v23 = vpack.c.bf16 %v434_v18, %v434_v18  ;;  %v437_v24 = vmax.f32 %v797_v22, 0.0  ;;  %v306_v25 = vpop.f32.mrf.mxu0 }
  0xe1   : > { %579 = vst.msk [vmem:[%s911_s21 + $0x10] sm:$0xf] %vm574_vm1, %v727_v20  ;;  %v730_v26 = vpack.c.bf16 %v421_v21, %v421_v21  ;;  %v419_v27 = vmax.f32 %v306_v25, 0.0  ;;  %v370_v28 = vpop.f32.mrf.mxu1 }
  0xe2   : > { %595 = vst.msk [vmem:[%s911_s21 + $0x50] sm:$0xf] %vm574_vm1, %v743_v23  ;;  %v746_v29 = vpack.c.bf16 %v437_v24, %v437_v24  ;;  %v435_v30 = vmax.f32 %v370_v28, 0.0  ;;  %v784_v31 = vpop.f32.mrf.mxu0 }
  0xe3   : > { %582 = vst.msk [vmem:[%s911_s21 + $0x1c] sm:$0xf] %vm574_vm1, %v730_v26  ;;  %v728_v32 = vpack.c.bf16 %v419_v27, %v419_v27  ;;  %v424_v33 = vmax.f32 %v784_v31, 0.0  ;;  %v800_v34 = vpop.f32.mrf.mxu1 }
  0xe4   : > { %598 = vst.msk [vmem:[%s911_s21 + $0x5c] sm:$0xf] %vm574_vm1, %v746_v29  ;;  %v744_v35 = vpack.c.bf16 %v435_v30, %v435_v30  ;;  %v440_v36 = vmax.f32 %v800_v34, 0.0  ;;  %v319_v37 = vpop.f32.mrf.mxu0 }
  0xe5   : > { %580 = vst.msk [vmem:[%s911_s21 + $0x14] sm:$0xf] %vm574_vm1, %v728_v32  ;;  %v733_v38 = vpack.c.bf16 %v424_v33, %v424_v33  ;;  %v422_v39 = vmax.f32 %v319_v37, 0.0  ;;  %v383_v40 = vpop.f32.mrf.mxu1 }
  0xe6   : > { %596 = vst.msk [vmem:[%s911_s21 + $0x54] sm:$0xf] %vm574_vm1, %v744_v35  ;;  %v749_v41 = vpack.c.bf16 %v440_v36, %v440_v36  ;;  %v438_v42 = vmax.f32 %v383_v40, 0.0  ;;  %v785_v43 = vpop.f32.mrf.mxu0 }
  0xe7   : > { %585 = vst.msk [vmem:[%s911_s21 + $0x28] sm:$0xf] %vm574_vm1, %v733_v38  ;;  %v731_v44 = vpack.c.bf16 %v422_v39, %v422_v39  ;;  %v425_v45 = vmax.f32 %v785_v43, 0.0  ;;  %v801_v46 = vpop.f32.mrf.mxu1 }
  0xe8   : > { %601 = vst.msk [vmem:[%s911_s21 + $0x68] sm:$0xf] %vm574_vm1, %v749_v41  ;;  %v747_v47 = vpack.c.bf16 %v438_v42, %v438_v42  ;;  %v441_v48 = vmax.f32 %v801_v46, 0.0  ;;  %v322_v49 = vpop.f32.mrf.mxu0 }
  0xe9   : > { %583 = vst.msk [vmem:[%s911_s21 + $0x20] sm:$0xf] %vm574_vm1, %v731_v44  ;;  %v734_v50 = vpack.c.bf16 %v425_v45, %v425_v45  ;;  %v423_v51 = vmax.f32 %v322_v49, 0.0  ;;  %v386_v52 = vpop.f32.mrf.mxu1 }
  0xea   : > { %599 = vst.msk [vmem:[%s911_s21 + $0x60] sm:$0xf] %vm574_vm1, %v747_v47  ;;  %v750_v53 = vpack.c.bf16 %v441_v48, %v441_v48  ;;  %v439_v54 = vmax.f32 %v386_v52, 0.0  ;;  %v788_v55 = vpop.f32.mrf.mxu0 }
  0xeb   : > { %586 = vst.msk [vmem:[%s911_s21 + $0x2c] sm:$0xf] %vm574_vm1, %v734_v50  ;;  %v732_v56 = vpack.c.bf16 %v423_v51, %v423_v51  ;;  %v428_v57 = vmax.f32 %v788_v55, 0.0  ;;  %v804_v58 = vpop.f32.mrf.mxu1 }
  0xec   : > { %602 = vst.msk [vmem:[%s911_s21 + $0x6c] sm:$0xf] %vm574_vm1, %v750_v53  ;;  %v748_v59 = vpack.c.bf16 %v439_v54, %v439_v54  ;;  %v444_v60 = vmax.f32 %v804_v58, 0.0  ;;  %v335_v61 = vpop.f32.mrf.mxu0 }
  0xed   : > { %584 = vst.msk [vmem:[%s911_s21 + $0x24] sm:$0xf] %vm574_vm1, %v732_v56  ;;  %v737_v62 = vpack.c.bf16 %v428_v57, %v428_v57  ;;  %v426_v63 = vmax.f32 %v335_v61, 0.0  ;;  %v399_v0 = vpop.f32.mrf.mxu1 }
  0xee   : > { %600 = vst.msk [vmem:[%s911_s21 + $0x64] sm:$0xf] %vm574_vm1, %v748_v59  ;;  %v753_v1 = vpack.c.bf16 %v444_v60, %v444_v60  ;;  %v442_v2 = vmax.f32 %v399_v0, 0.0  ;;  %v789_v3 = vpop.f32.mrf.mxu0 }
  0xef   : > { %589 = vst.msk [vmem:[%s911_s21 + $0x38] sm:$0xf] %vm574_vm1, %v737_v62  ;;  %v735_v4 = vpack.c.bf16 %v426_v63, %v426_v63  ;;  %v429_v5 = vmax.f32 %v789_v3, 0.0  ;;  %v805_v6 = vpop.f32.mrf.mxu1 }
  0xf0   : > { %605 = vst.msk [vmem:[%s911_s21 + $0x78] sm:$0xf] %vm574_vm1, %v753_v1  ;;  %v751_v7 = vpack.c.bf16 %v442_v2, %v442_v2  ;;  %v445_v8 = vmax.f32 %v805_v6, 0.0  ;;  %v338_v9 = vpop.f32.mrf.mxu0 }
  0xf1   : > { %587 = vst.msk [vmem:[%s911_s21 + $0x30] sm:$0xf] %vm574_vm1, %v735_v4  ;;  %v738_v10 = vpack.c.bf16 %v429_v5, %v429_v5  ;;  %v427_v11 = vmax.f32 %v338_v9, 0.0  ;;  %v402_v12 = vpop.f32.mrf.mxu1 }
  0xf2   : > { %603 = vst.msk [vmem:[%s911_s21 + $0x70] sm:$0xf] %vm574_vm1, %v751_v7  ;;  %v754_v13 = vpack.c.bf16 %v445_v8, %v445_v8  ;;  %v443_v14 = vmax.f32 %v402_v12, 0.0 }
  0xf3   : > { %590 = vst.msk [vmem:[%s911_s21 + $0x3c] sm:$0xf] %vm574_vm1, %v738_v10  ;;  %v736_v15 = vpack.c.bf16 %v427_v11, %v427_v11 }
  0xf4   : > { %606 = vst.msk [vmem:[%s911_s21 + $0x7c] sm:$0xf] %vm574_vm1, %v754_v13  ;;  %v752_v16 = vpack.c.bf16 %v443_v14, %v443_v14 }
  0xf5   : > { %588 = vst.msk [vmem:[%s911_s21 + $0x34] sm:$0xf] %vm574_vm1, %v736_v15 }
  0xf6   : > { %604 = vst.msk [vmem:[%s911_s21 + $0x74] sm:$0xf] %vm574_vm1, %v752_v16 }
  0xf7 PF: > { %s12_s9 = sadd.s32 1, %s823_s9  }
  0xf8   : > { %p9_p4 = scmp.ge.s32.totalorder %s12_s9, 4  }
  0xfa   :  { %11 = sbr.rel (!%p9_p4) target bundleno = 1 (0x1), region = 58 }

// kernel: bottleneck_forward.4
= control target key start
LH: loop header
LB: loop body
LE: loop exit
PB: predicated region body
PF: predicated region fallthrough
CT: control target
= control target key end

     0   :  { %s518_s9 = smov 0   ;;  %s565_s0 = inlined_call_operand.vmem [shape: bf16[128,72], index: 0, kind: input, shape index: {}]   ;;  %s566_s1 = inlined_call_operand.vmem [shape: bf16[72,8], index: 1, kind: input, shape index: {}]   ;;  %s567_s2 = inlined_call_operand.vmem [shape: bf16[128,8], index: 2, kind: output, shape index: {}]  }
   0x1 LB: > { %s399_s10 = sadd.s32 4294967295, %s501_s9   ;;  %p403_p0 = scmp.ge.s32.totalorder %s501_s9, 1  ;;  %s501_s9 = sphi %s518_s9, %s12_s9  }
   0x2   : > { %p113_p1 = scmp.lt.s32.totalorder %s501_s9, 3 }
   0x4   : > { %p114_p2 = pnand %p403_p0, %p113_p1 }
   0x5   : > { %s404_s15 = sshll.u32 (!%p114_p2), %s399_s10, 3 }
   0x6   : > { %117 = sbr.rel (%p114_p2) target bundleno = 236 (0xec), region = 28  ;;  %p136_p3 = scmp.lt.s32.totalorder (!%p114_p2), %s404_s15, 15 }
   0xb   : > { %v486_v0 = vld [vmem:[%s566_s1 + $0x20] ss:$0 sps:$4 sm:$0xff]   ;;  %vm225_vm0 = vcmask 1043456   ;;  %v487_v1 = vld [vmem:[%s566_s1 + $0x18] sm:$0xff]   ;;  %v488_v3 = vld [vmem:[%s566_s1 + $0x10] sm:$0xff]   ;;  %s569_s15 = smov (!%p136_p3, %s404_s15), 15 }
   0xc   : > { %476 = vmatprep.subr.msk.bf16.mxu0 %vm225_vm0, %v486_v0  ;;  %477 = vmatprep.subr.msk.bf16.mxu1 %vm225_vm0, %v486_v0  ;;  %v227_v2 = vsel %vm225_vm0, %v486_v0, 0  ;;  %v489_v4 = vld [vmem:[%s566_s1 + $0x8] sm:$0xff]   ;;  %s405_s20 = sshll.u32 %s569_s15, 2  ;;  %vm212_vm1 = vcmask 588800   ;;  %v490_v7 = vld [vmem:[%s566_s1] sm:$0xff]   ;;  %vm334_vm2 = vcmask 60416  }
   0xd   : > { %449 = vmatpush3.bf16.msra.mxu0 %v227_v2  ;;  %471 = vmatpush3.bf16.msra.mxu1 %v227_v2  ;;  %s139_s23 = scalar_lea.vmem %s565_s0, %s405_s20  ;;  %s145_s28 = scalar_lea.vmem %s567_s2, %s405_s20 }
   0xe   : > { %450 = vmatprep.subr.bf16.mxu0 %v487_v1  ;;  %467 = vmatprep.subr.bf16.mxu1 %v487_v1  ;;  %v491_v5 = vld [vmem:[%s139_s23] sm:$0xff]   ;;  %v492_v6 = vld [vmem:[%s139_s23 + $0x10] sm:$0xff]   ;;  %v493_v8 = vld [vmem:[%s139_s23 + $0x8] sm:$0xff]  }
   0xf   : > { %458 = vmatprep.mubr.msk.bf16.mxu0 %vm212_vm1, %v491_v5  ;;  %462 = vmatprep.mubr.msk.bf16.mxu1 %vm212_vm1, %v492_v6  ;;  %v494_v9 = vld [vmem:[%s139_s23 + $0x18] sm:$0xff]  }
  0x11   : > { %451 = vmatpush3.bf16.msra.mxu0 %v487_v1  ;;  %472 = vmatpush3.bf16.msra.mxu1 %v487_v1 }
  0x12   : > { %452 = vmatprep.subr.bf16.mxu0 %v488_v3  ;;  %468 = vmatprep.subr.bf16.mxu1 %v488_v3 }
  0x15   : > { %453 = vmatpush3.bf16.msra.mxu0 %v488_v3  ;;  %473 = vmatpush3.bf16.msra.mxu1 %v488_v3 }
  0x16   : > { %454 = vmatprep.subr.bf16.mxu0 %v489_v4  ;;  %469 = vmatprep.subr.bf16.mxu1 %v489_v4 }
  0x19   : > { %455 = vmatpush3.bf16.msra.mxu0 %v489_v4  ;;  %474 = vmatpush3.bf16.msra.mxu1 %v489_v4 }
  0x1a   : > { %456 = vmatprep.subr.bf16.mxu0 %v490_v7  ;;  %470 = vmatprep.subr.bf16.mxu1 %v490_v7 }
  0x1d   : > { %457 = vmatpush3.bf16.msra.mxu0 %v490_v7  ;;  %475 = vmatpush3.bf16.msra.mxu1 %v490_v7 }
  0x20   : > { %459 = vmatmul.mubr.msk.bf16.vlgmr.msra.gmra.mxu0 %vm212_vm1, %v493_v8  ;;  %463 = vmatmul.mubr.msk.bf16.vlgmr.msra.gmra.mxu1 %vm212_vm1, %v494_v9 }
  0xe0   : > { %v460_v10 = vpop.f32.mrf.mxu0  ;;  %v464_v11 = vpop.f32.mrf.mxu1 }
  0xe1   : > { %v296_v12 = vmax.f32 %v460_v10, 0.0  ;;  %v300_v13 = vmax.f32 %v464_v11, 0.0 }
  0xe2   : > { %v263_v14 = vpop.f32.mrf.mxu0  ;;  %v279_v15 = vpop.f32.mrf.mxu1 }
  0xe3   : > { %v433_v16 = vpack.c.bf16 %v296_v12, %v296_v12  ;;  %v437_v17 = vpack.c.bf16 %v300_v13, %v300_v13  ;;  %v294_v18 = vmax.f32 %v263_v14, 0.0  ;;  %v298_v19 = vmax.f32 %v279_v15, 0.0 }
  0xe4   : > { %v461_v20 = vpop.f32.mrf.mxu0  ;;  %v465_v21 = vpop.f32.mrf.mxu1 }
  0xe5   : > { %337 = vst.msk [vmem:[%s145_s28 + $0x8] sm:$0xf] %vm334_vm2, %v433_v16  ;;  %341 = vst.msk [vmem:[%s145_s28 + $0x18] sm:$0xf] %vm334_vm2, %v437_v17  ;;  %v431_v22 = vpack.c.bf16 %v294_v18, %v294_v18  ;;  %v435_v23 = vpack.c.bf16 %v298_v19, %v298_v19  ;;  %v297_v24 = vmax.f32 %v461_v20, 0.0  ;;  %v301_v25 = vmax.f32 %v465_v21, 0.0 }
  0xe6   : > { %v266_v26 = vpop.f32.mrf.mxu0  ;;  %v282_v27 = vpop.f32.mrf.mxu1 }
  0xe7   : > { %335 = vst.msk [vmem:[%s145_s28] sm:$0xf] %vm334_vm2, %v431_v22  ;;  %339 = vst.msk [vmem:[%s145_s28 + $0x10] sm:$0xf] %vm334_vm2, %v435_v23  ;;  %v434_v28 = vpack.c.bf16 %v297_v24, %v297_v24  ;;  %v438_v29 = vpack.c.bf16 %v301_v25, %v301_v25  ;;  %v295_v30 = vmax.f32 %v266_v26, 0.0  ;;  %v299_v31 = vmax.f32 %v282_v27, 0.0 }
  0xe9   : > { %338 = vst.msk [vmem:[%s145_s28 + $0xc] sm:$0xf] %vm334_vm2, %v434_v28  ;;  %342 = vst.msk [vmem:[%s145_s28 + $0x1c] sm:$0xf] %vm334_vm2, %v438_v29  ;;  %v432_v32 = vpack.c.bf16 %v295_v30, %v295_v30  ;;  %v436_v33 = vpack.c.bf16 %v299_v31, %v299_v31 }
  0xeb   : > { %336 = vst.msk [vmem:[%s145_s28 + $0x4] sm:$0xf] %vm334_vm2, %v432_v32  ;;  %340 = vst.msk [vmem:[%s145_s28 + $0x14] sm:$0xf] %vm334_vm2, %v436_v33 }
  0xec PF: > { %s12_s9 = sadd.s32 1, %s501_s9  }
  0xed   : > { %p9_p4 = scmp.ge.s32.totalorder %s12_s9, 4  }
  0xef   :  { %11 = sbr.rel (!%p9_p4) target bundleno = 1 (0x1), region = 58 }

// kernel: bottleneck_forward.5
= control target key start
LH: loop header
LB: loop body
LE: loop exit
PB: predicated region body
PF: predicated region fallthrough
CT: control target
= control target key end

     0   :  { %11 = vsyncpa [#allocation3], 0  ;;  %s1070_s0 = inlined_call_operand.vmem [shape: bf16[128,8], index: 0, kind: input, shape index: {}]   ;;  %s1071_s1 = inlined_call_operand.vmem [shape: bf16[8,32], index: 1, kind: input, shape index: {}]   ;;  %s1072_s2 = inlined_call_operand.vmem [shape: f32[128,16], index: 2, kind: input, shape index: {}]   ;;  %s1073_s3 = inlined_call_operand.vmem [shape: bf16[16,32], index: 3, kind: input, shape index: {}]   ;;  %s1074_s4 = inlined_call_operand.hbm [shape: f32[128,32], index: 4, kind: output, shape index: {0}]   ;;  %s1075_s5 = inlined_call_operand.hbm [shape: f32[128,32], index: 5, kind: output, shape index: {1}]  }
   0x1   :  { %13 = vsyncpa [#allocation3 + $0x1], 0 }
   0x2   :  { %14 = vsyncpa [#allocation5], 0 }
   0x3   :  { %16 = vsyncpa [#allocation5 + $0x1], 0  ;;  %s877_s18 = smov 0   ;;  %s879_s19 = smov 0  }
   0x4   :  { %s881_s20 = smov 0   ;;  %s883_s21 = smov 0  }
   0x5 LB: > { %s898_s22 = sadd.s32 4294967295, %s841_s21   ;;  %s636_s23 = sadd.s32 4294967294, %s841_s21   ;;  %s841_s21 = sphi %s883_s21, %s1081_s21   ;;  %s837_s20 = sphi %s881_s20, %s1080_s20   ;;  %s833_s19 = sphi %s879_s19, %s1079_s19   ;;  %s829_s18 = sphi %s877_s18, %s1078_s18  }
   0x6   : > { %s902_s24 = sadd.s32 1, %s841_s21   ;;  %s123_s25 = sadd.s32 1, %s837_s20 }
   0x7   : > { %s120_s26 = ssub.s32 %s841_s21, %s902_s24  ;;  %p133_p0 = scmp.ne.s32.totalorder %s837_s20, %s833_s19 }
   0x8   : > { %p121_p1 = scmp.eq.s32.totalorder %s120_s26, 0  ;;  %p134_p2 = scmp.eq.s32.totalorder %s898_s22, 1 }
   0x9   : > { %p139_p3 = scmp.ne.s32.totalorder %s833_s19, %s829_s18  ;;  %p140_p4 = scmp.eq.s32.totalorder %s636_s23, 1 }
   0xa   : > { %s913_s27 = scalar_select %p121_p1, %s837_s20, %s123_s25  }
   0xb   : > { %p915_p5 = por %p134_p2, %p133_p0  ;;  %p919_p6 = por %p140_p4, %p139_p3 }
   0xc   : > { %p639_p7 = scmp.ge.s32.totalorder %s841_s21, 1  ;;  %p208_p8 = scmp.lt.s32.totalorder %s841_s21, 3 }
   0xe   : > { %p209_p9 = pnand %p639_p7, %p208_p8 }
   0xf   : > { %s642_s9 = sshll.u32 (!%p209_p9), %s898_s22, 3  ;;  %s947_s23 = sand.u32 (!%p209_p9), 1, %s833_s19  }
  0x10   : > { %212 = sbr.rel (%p209_p9) target bundleno = 273 (0x111), region = 36  ;;  %p247_p10 = scmp.lt.s32.totalorder (!%p209_p9), %s642_s9, 15 }
  0x11   : > { %s640_s25 = sshll.u32 (!%p209_p9), %s947_s23, 6  ;;  %s667_s6 = sshll.u32 (!%p209_p9), %s898_s22, 10 }
  0x12   : > { %s950_s26 = scalar_lea.vmem (!%p209_p9), [#allocation4], %s640_s25  ;;  %s954_s30 = scalar_lea.vmem (!%p209_p9), [#allocation2], %s640_s25 }
  0x13   : > { %s530_s7 = sshll.u32 (!%p209_p9), %s950_s26, 4  ;;  %s514_s8 = sshll.u32 (!%p209_p9), %s954_s30, 4  ;;  %s988_s7 = int_to_ptr.vmem [resolvable:$true] %s530_s7  ;;  %s999_s8 = int_to_ptr.vmem [resolvable:$true] %s514_s8 }
  0x14   : > { %s997_s13 = scalar_lea.hbm (!%p209_p9), %s1074_s4, %s667_s6  ;;  %s751_s15 = scalar_lea.vmem (!%p209_p9), %s988_s7, 1024 }
  0x15   : > { %v746_v0 = vld [vmem:[%s1073_s3] sm:$0xff]   ;;  %vm401_vm0 = vcmask 1043456   ;;  %s1083_s9 = smov (!%p247_p10, %s642_s9), 15  ;;  %vm290_vm1 = vcmask 130048   ;;  %vm388_vm2 = vcmask 64512   ;;  %vm478_vm3 = vcmask 261120   ;;  %p752_p11 = scmp.ne.s32.totalorder %s988_s7, %s751_s15 }
  0x16   : > { %v269_v1 = vld [vmem:[%s1071_s1] sm:$0xf]  ;;  %679 = vmatprep.subr.bf16.mxu0 %v746_v0  ;;  %s645_s10 = sshll.u32 %s1083_s9, 3  ;;  %s643_s11 = sshll.u32 %s1083_s9, 2 }
  0x17   : > { %699 = vmatprep.subr.msk.bf16.mxu1 %vm401_vm0, %v269_v1  ;;  %v403_v2 = vsel %vm401_vm0, %v269_v1, 0  ;;  %680 = vmatpush3.bf16.msra.mxu0 %v746_v0  ;;  %s256_s14 = scalar_lea.vmem %s1072_s2, %s645_s10  ;;  %s250_s17 = scalar_lea.vmem %s1070_s0, %s643_s11 }
  0x18   : > { %690 = vmatpush3.bf16.msra.mxu1 %v403_v2  ;;  %v270_v3 = vld [vmem:[%s256_s14] sm:$0xff]  ;;  %v271_v4 = vld [vmem:[%s256_s14 + $0x8] sm:$0xff]  ;;  %v272_v7 = vld [vmem:[%s256_s14 + $0x10] sm:$0xff]  ;;  %s986_s10 = scalar_lea.hbm %s1075_s5, %s667_s6  ;;  %p753_p12 = pnand %p752_p11, %p915_p5 }
  0x19   : > { %v278_v5 = vpack.c.bf16 %v271_v4, %v270_v3  ;;  %v747_v6 = vld [vmem:[%s250_s17] sm:$0xff]   ;;  %v273_v8 = vld [vmem:[%s256_s14 + $0x18] sm:$0xff]  ;;  %v748_v10 = vld [vmem:[%s250_s17 + $0x8] sm:$0xff]   ;;  %s843_s16 = smov [#allocation4]  }
  0x1a   : > { %691 = vmatprep.mubr.msk.bf16.mxu1 %vm388_vm2, %v747_v6  ;;  %v279_v9 = vpack.c.bf16 %v273_v8, %v272_v7  ;;  %v274_v11 = vld [vmem:[%s256_s14 + $0x20] sm:$0xff]  ;;  %v275_v12 = vld [vmem:[%s256_s14 + $0x28] sm:$0xff]  ;;  %v749_v14 = vld [vmem:[%s250_s17 + $0x10] sm:$0xff]   ;;  %p754_p13 = pneg %p753_p12 }
  0x1b   : > { %681 = vmatprep.mubr.msk.bf16.mxu0 %vm290_vm1, %v278_v5  ;;  %v280_v13 = vpack.c.bf16 %v275_v12, %v274_v11  ;;  %692 = vmatmul.mubr.msk.bf16.vlgmr.msra.gmra.mxu1 %vm388_vm2, %v748_v10  ;;  %v276_v15 = vld [vmem:[%s256_s14 + $0x30] sm:$0xff]  ;;  %v277_v16 = vld [vmem:[%s256_s14 + $0x38] sm:$0xff]  ;;  %s501_s14 = scalar_lea.sflag [#allocation5], %s947_s23 }
  0x1c   : > { %682 = vmatmul.mubr.msk.bf16.vlgmr.msra.gmra.mxu0 %vm290_vm1, %v279_v9  ;;  %695 = vmatprep.mubr.msk.bf16.mxu1 %vm388_vm2, %v749_v14  ;;  %v281_v17 = vpack.c.bf16 %v277_v16, %v276_v15  ;;  %v750_v18 = vld [vmem:[%s250_s17 + $0x18] sm:$0xff]   ;;  %s755_s17 = sshll.u32 %s843_s16, 4  ;;  %s756_s17 = int_to_ptr.vmem [resolvable:$false] %s755_s17 }
  0x1d   : > { %685 = vmatprep.mubr.msk.bf16.mxu0 %vm290_vm1, %v280_v13  ;;  %s757_s25 = scalar_lea.vmem %s756_s17, 2048  ;;  %p758_p0 = scmp.lt.s32.totalorder %s988_s7, %s756_s17 }
  0x1e   : > { %p759_p1 = scmp.lt.s32.totalorder %s757_s25, %s751_s15 }
  0x20   : > { %p760_p2 = por %p759_p1, %p758_p0 }
  0x22   : > { %p761_p3 = pnand %p760_p2, %p754_p13 }
  0x23   : > { %696 = vmatmul.mubr.msk.bf16.gmra.mxu1 %vm388_vm2, %v750_v18 }
  0x24   : > { %686 = vmatmul.mubr.msk.bf16.gmra.mxu0 %vm290_vm1, %v281_v17 }
  0xdb   : > { %v693_v20 = vpop.f32.mrf.mxu1 }
  0xdc   : > { %v683_v19 = vpop.f32.mrf.mxu0 }
  0xdd   : > { %v448_v21 = vadd.f32 %v693_v20, %v683_v19  ;;  %v439_v23 = vpop.f32.mrf.mxu1 }
  0xde   : > { %v337_v22 = vpop.f32.mrf.mxu0 }
  0xdf   : > { %v472_v24 = vmax.f32 %v448_v21, 0.0  ;;  %489 = vst.msk [vmem:[%s950_s26 + $0x10] sm:$0xff] %vm478_vm3, %v448_v21  ;;  %v440_v25 = vadd.f32 %v439_v23, %v337_v22  ;;  %v694_v27 = vpop.f32.mrf.mxu1 }
  0xe0   : > { %v684_v26 = vpop.f32.mrf.mxu0 }
  0xe1   : > { %481 = vst.msk [vmem:[%s954_s30 + $0x10] sm:$0xff] %vm478_vm3, %v472_v24  ;;  %v470_v28 = vmax.f32 %v440_v25, 0.0  ;;  %487 = vst.msk [vmem:[%s950_s26] sm:$0xff] %vm478_vm3, %v440_v25  ;;  %v451_v29 = vadd.f32 %v694_v27, %v684_v26  ;;  %v442_v31 = vpop.f32.mrf.mxu1 }
  0xe2   : > { %v340_v30 = vpop.f32.mrf.mxu0 }
  0xe3   : > { %479 = vst.msk [vmem:[%s954_s30] sm:$0xff] %vm478_vm3, %v470_v28  ;;  %v473_v32 = vmax.f32 %v451_v29, 0.0  ;;  %490 = vst.msk [vmem:[%s950_s26 + $0x18] sm:$0xff] %vm478_vm3, %v451_v29  ;;  %v443_v33 = vadd.f32 %v442_v31, %v340_v30  ;;  %v697_v35 = vpop.f32.mrf.mxu1 }
  0xe4   : > { %v687_v34 = vpop.f32.mrf.mxu0 }
  0xe5   : > { %482 = vst.msk [vmem:[%s954_s30 + $0x18] sm:$0xff] %vm478_vm3, %v473_v32  ;;  %v471_v36 = vmax.f32 %v443_v33, 0.0  ;;  %488 = vst.msk [vmem:[%s950_s26 + $0x8] sm:$0xff] %vm478_vm3, %v443_v33  ;;  %v464_v37 = vadd.f32 %v697_v35, %v687_v34  ;;  %v455_v39 = vpop.f32.mrf.mxu1 }
  0xe6   : > { %v353_v38 = vpop.f32.mrf.mxu0 }
  0xe7   : > { %480 = vst.msk [vmem:[%s954_s30 + $0x8] sm:$0xff] %vm478_vm3, %v471_v36  ;;  %v476_v40 = vmax.f32 %v464_v37, 0.0  ;;  %493 = vst.msk [vmem:[%s950_s26 + $0x30] sm:$0xff] %vm478_vm3, %v464_v37  ;;  %v456_v41 = vadd.f32 %v455_v39, %v353_v38  ;;  %v698_v43 = vpop.f32.mrf.mxu1 }
  0xe8   : > { %v688_v42 = vpop.f32.mrf.mxu0 }
  0xe9   : > { %485 = vst.msk [vmem:[%s954_s30 + $0x30] sm:$0xff] %vm478_vm3, %v476_v40  ;;  %v474_v44 = vmax.f32 %v456_v41, 0.0  ;;  %491 = vst.msk [vmem:[%s950_s26 + $0x20] sm:$0xff] %vm478_vm3, %v456_v41  ;;  %v467_v45 = vadd.f32 %v698_v43, %v688_v42  ;;  %v458_v47 = vpop.f32.mrf.mxu1 }
  0xea   : > { %v356_v46 = vpop.f32.mrf.mxu0 }
  0xeb   : > { %483 = vst.msk [vmem:[%s954_s30 + $0x20] sm:$0xff] %vm478_vm3, %v474_v44  ;;  %v477_v48 = vmax.f32 %v467_v45, 0.0  ;;  %494 = vst.msk [vmem:[%s950_s26 + $0x38] sm:$0xff] %vm478_vm3, %v467_v45  ;;  %v459_v49 = vadd.f32 %v458_v47, %v356_v46 }
  0xed   : > { %486 = vst.msk [vmem:[%s954_s30 + $0x38] sm:$0xff] %vm478_vm3, %v477_v48  ;;  %v475_v50 = vmax.f32 %v459_v49, 0.0  ;;  %492 = vst.msk [vmem:[%s950_s26 + $0x28] sm:$0xff] %vm478_vm3, %v459_v49 }
  0xee   : > { %764 = shalt.err (!%p761_p3)
}
  0xef   : > { %s765_s26 = scalar_lea.hbm %s986_s10, 1024  ;;  %s769_s9 = scalar_lea.hbm %s1075_s5, 2048 }
  0xf0   : > { %p766_p4 = scmp.ne.s32.totalorder %s986_s10, %s765_s26  ;;  %p770_p9 = scmp.lt.s32.totalorder %s986_s10, %s1075_s5 }
  0xf1   : > { %p771_p10 = scmp.lt.s32.totalorder %s769_s9, %s765_s26 }
  0xf2   : > { %p767_p7 = pnand %p766_p4, %p915_p5 }
  0xf3   : > { %p772_p11 = por %p771_p10, %p770_p9 }
  0xf4   : > { %p768_p8 = pneg %p767_p7 }
  0xf6   : > { %p773_p12 = pnand %p772_p11, %p768_p8 }
  0xf8   : > { %776 = shalt.err (!%p773_p12)
}
  0xf9   : > { %s844_s15 = smov 128   ;;  %s845_s16 = smov 8   ;;  %484 = vst.msk [vmem:[%s954_s30 + $0x28] sm:$0xff] %vm478_vm3, %v475_v50 }
  0xfa   : > { %701 = dma.vmem_to_hbm [thread:$0]  (%p915_p5), %s988_s7, 1024, %s986_s10, %s501_s14, %s844_s15, %s844_s15, %s845_s16  }
  0xfb   : > { %s496_s17 = scalar_lea.sflag [#allocation3], %s947_s23  ;;  %s777_s25 = scalar_lea.vmem %s999_s8, 1024 }
  0xfc   : > { %p778_p13 = scmp.ne.s32.totalorder %s999_s8, %s777_s25  ;;  %s846_s26 = smov [#allocation2]  }
  0xfd   : > { %s781_s6 = sshll.u32 %s846_s26, 4  ;;  %s782_s6 = int_to_ptr.vmem [resolvable:$false] %s781_s6 }
  0xfe   : > { %p779_p0 = pnand %p778_p13, %p915_p5  ;;  %s783_s22 = scalar_lea.vmem %s782_s6, 2048 }
  0xff   : > { %p784_p2 = scmp.lt.s32.totalorder %s999_s8, %s782_s6  ;;  %p785_p3 = scmp.lt.s32.totalorder %s783_s22, %s777_s25 }
 0x100   : > { %p780_p1 = pneg %p779_p0 }
 0x101   : > { %p786_p4 = por %p785_p3, %p784_p2 }
 0x103   : > { %p787_p7 = pnand %p786_p4, %p780_p1 }
 0x105   : > { %790 = shalt.err (!%p787_p7)
}
 0x106   : > { %s791_s30 = scalar_lea.hbm %s997_s13, 1024  ;;  %s795_s10 = scalar_lea.hbm %s1074_s4, 2048 }
 0x107   : > { %p792_p8 = scmp.ne.s32.totalorder %s997_s13, %s791_s30  ;;  %p796_p11 = scmp.lt.s32.totalorder %s997_s13, %s1074_s4 }
 0x108   : > { %p797_p12 = scmp.lt.s32.totalorder %s795_s10, %s791_s30 }
 0x109   : > { %p793_p9 = pnand %p792_p8, %p915_p5 }
 0x10a   : > { %p798_p13 = por %p797_p12, %p796_p11 }
 0x10b   : > { %p794_p10 = pneg %p793_p9 }
 0x10d   : > { %p799_p0 = pnand %p798_p13, %p794_p10 }
 0x10f   : > { %802 = shalt.err (!%p799_p0)
}
 0x110   : > { %700 = dma.vmem_to_hbm [thread:$0]  (%p915_p5), %s999_s8, 1024, %s997_s13, %s496_s17, %s844_s15, %s844_s15, %s845_s16  }
 0x111 PF: > { %p711_p1 = scmp.ge.s32.totalorder %s841_s21, 2  ;;  %s545_s11 = sand.u32 1, %s829_s18  }
 0x112   : > { %s546_s12 = scalar_lea.sflag [#allocation3], %s545_s11 }
 0x113   : > { %p705_p2 = pnand %p711_p1, %p919_p6 }
 0x115   : > { %p706_p3 = pneg %p705_p2 }
 0x117   : > { %820 = dma.done.wait (%p706_p3), %s546_s12, 1024  }
 0x118   : > { %822 = vsyncadd (%p706_p3), %s546_s12, 4294966272  ;;  %s555_s25 = scalar_lea.sflag [#allocation5], %s545_s11 }
 0x119   : > { %824 = dma.done.wait (%p706_p3), %s555_s25, 1024  }
 0x11a   : > { %826 = vsyncadd (%p706_p3), %s555_s25, 4294966272  ;;  %p19_p5 = scmp.ge.s32.totalorder %s902_s24, 4   ;;  %s1078_s18 = smov %s833_s19 }
 0x11b   : > { %s1079_s19 = smov %s837_s20  ;;  %s1080_s20 = smov %s913_s27 }
 0x11c   : > { %s1081_s21 = smov %s902_s24  ;;  %21 = sbr.rel (!%p19_p5) target bundleno = 5 (0x5), region = 91 }
 0x121   :  { %560 = vsyncpa [#allocation3], 1 }
 0x122   :  { %562 = vsyncpa [#allocation3 + $0x1], 1 }
 0x123   :  { %563 = vsyncpa [#allocation5], 1 }
 0x124   :  { %565 = vsyncpa [#allocation5 + $0x1], 1 }

</bundles_post_ra>
